<compile_context>
chip_gen: v5e
topology: v5e:2x2
jax: 0.10.0
libtpu: 0.0.40
codegen_flags: <defaults>
</compile_context>

<pallas_src>
import functools

import jax
import jax.numpy as jnp
from jax.experimental import pallas as pl
from jax.experimental.pallas import tpu as pltpu


def _triplet_loss_kernel(a_ref, p_ref, n_ref, out_ref, *,
                         margin, batch, tb, r, d):
    """One batch tile: partial sum of max(d_ap - d_an + margin, 0)."""
    i = pl.program_id(0)

    a = a_ref[...].astype(jnp.float32)
    p = p_ref[...].astype(jnp.float32)
    n = n_ref[...].astype(jnp.float32)

    # Fused distance difference:
    #   sum((a-p)^2) - sum((a-n)^2) == sum((a-p)^2 - (a-n)^2)
    dp = a - p
    dn = a - n
    sq = dp * dp - dn * dn                                      # (tb, r*d)

    # Packed-row index within the full (possibly packed) batch.
    packed_row = i * tb + jax.lax.broadcasted_iota(jnp.int32, (tb, 1), 0)

    partial = jnp.float32(0.0)
    for j in range(r):                                          # unrolled, r <= 16
        s = jnp.sum(sq[:, j * d:(j + 1) * d], axis=-1, keepdims=True) + margin
        h = jnp.maximum(s, 0.0)                                 # (tb, 1) hinge
        # Mask rows past the true batch.  The ragged last block reads
        # undefined tail rows; jnp.where is a select, so garbage/NaN from
        # those rows cannot propagate into the partial sum.
        logical_row = packed_row * r + j
        h = jnp.where(logical_row < batch, h, 0.0)
        partial = partial + jnp.sum(h)

    # Lane-dense per-tile partial; no cross-step accumulator, so the grid
    # axis stays "parallel" (shards across both TensorCores on v7x).
    out_ref[...] = jnp.full(out_ref.shape, partial, dtype=out_ref.dtype)


def triplet_loss(anchor, positive, negative, *, margin=0.2, reduce="mean"):
    """Pallas TPU implementation of TripletLoss.forward; returns a scalar."""
    assert reduce in ("mean", "sum")
    assert anchor.shape == positive.shape == negative.shape
    assert anchor.ndim == 2
    B, D = anchor.shape
    itemsize = jnp.dtype(anchor.dtype).itemsize
    sub = max(8, 32 // itemsize)              # sublane granularity per dtype

    # --- Lane packing for small D (free row-major reshape, no HBM traffic).
    r = 1
    if D < 128 and 128 % D == 0 and B % (128 // D) == 0:
        r = 128 // D
    Bp, W = B // r, r * D
    if r > 1:
        anchor = anchor.reshape(Bp, W)
        positive = positive.reshape(Bp, W)
        negative = negative.reshape(Bp, W)

    # --- Generation-aware VMEM budget (v7x: 64 MiB/TC vs 128 MiB on v5e/v6e).
    vmem_cap = 64 * 1024 * 1024               # conservative default (v7x)
    try:
        cap = getattr(pltpu.get_tpu_info(), "vmem_capacity_bytes", None)
        if cap:
            vmem_cap = int(cap)
    except Exception:
        pass
    usable = min((vmem_cap * 3) // 4, 96 * 1024 * 1024)   # <=48 MiB on v7x

    # Per-row VMEM cost: 3 inputs x double-buffered, plus headroom for ~4
    # tile-sized f32 temporaries (f32 casts, a-p, a-n, squared diff).
    w_pad = pl.cdiv(W, 128) * 128
    per_row = 6 * w_pad * itemsize + 4 * w_pad * 4
    tb_budget = max(sub, ((usable // per_row) // sub) * sub)
    # Keep >= 4 grid steps when the batch allows it: preserves megacore
    # sharding on v7x and DMA/compute overlap.
    tb_steps = pl.cdiv(pl.cdiv(Bp, 4), sub) * sub
    tb = max(sub, min(tb_budget, tb_steps, 8192))
    tb = min(tb, pl.cdiv(Bp, sub) * sub)       # never tile past the batch
    # NOTE: for astronomically large D (single sub-row block near the VMEM
    # budget) a D-tiling grid axis with a per-row accumulator would be needed;
    # irrelevant for embedding-sized D.

    # Ragged batch: NO wrapper-side jnp.pad (would add a full extra HBM pass).
    g = pl.cdiv(Bp, tb)

    kernel = functools.partial(_triplet_loss_kernel, margin=float(margin),
                               batch=B, tb=tb, r=r, d=D)

    row_spec = pl.BlockSpec((tb, W), lambda i: (i, 0))
    partials = pl.pallas_call(
        kernel,
        out_shape=jax.ShapeDtypeStruct((g, 1, 128), jnp.float32),
        grid_spec=pltpu.PrefetchScalarGridSpec(
            num_scalar_prefetch=0,
            grid=(g,),
            in_specs=[row_spec, row_spec, row_spec],
            out_specs=pl.BlockSpec((1, 1, 128), lambda i: (i, 0, 0)),
        ),
        compiler_params=pltpu.CompilerParams(
            dimension_semantics=("parallel",),     # independent per-tile partials
            vmem_limit_bytes=int(usable),
        ),
        cost_estimate=pl.CostEstimate(
            flops=8 * B * D,
            transcendentals=0,
            bytes_accessed=3 * B * D * itemsize + g * 128 * 4,
        ),
    )(anchor, positive, negative)

    total = jnp.sum(partials[:, 0, 0])
    return total / B if reduce == "mean" else total


def _reference(anchor, positive, negative, margin=0.2, reduce="mean"):
    d_ap = jnp.sum((anchor - positive) ** 2, axis=-1)
    d_an = jnp.sum((anchor - negative) ** 2, axis=-1)
    loss = jnp.maximum(d_ap - d_an + margin, 0.0)
    return jnp.mean(loss) if reduce == "mean" else jnp.sum(loss)


if __name__ == "__main__":
    # Case 1: small embedding batch (exercises the lane-packing path: D=32
    # divides 128 and B % 4 == 0 -> packed to (2, 128)).
    k_a, k_p, k_n = jax.random.split(jax.random.PRNGKey(0), 3)
    B, D = 8, 32
    anchor = jax.random.normal(k_a, (B, D), dtype=jnp.float32)
    positive = jax.random.normal(k_p, (B, D), dtype=jnp.float32)
    negative = jax.random.normal(k_n, (B, D), dtype=jnp.float32)

    out = triplet_loss(anchor, positive, negative, margin=0.2, reduce="mean")
    out = jax.block_until_ready(out)
    ref = _reference(anchor, positive, negative, margin=0.2, reduce="mean")
    assert jnp.allclose(out, ref, atol=1e-4, rtol=1e-5), (out, ref)

    # Case 2: ragged batch, no packing (B % 4 != 0) -> cdiv grid with a
    # partial, in-kernel-masked last block; 'sum' reduction.
    k_a2, k_p2, k_n2 = jax.random.split(jax.random.PRNGKey(1), 3)
    B2, D2 = 10, 32
    a2 = jax.random.normal(k_a2, (B2, D2), dtype=jnp.float32)
    p2 = jax.random.normal(k_p2, (B2, D2), dtype=jnp.float32)
    n2 = jax.random.normal(k_n2, (B2, D2), dtype=jnp.float32)

    out2 = triplet_loss(a2, p2, n2, margin=0.2, reduce="sum")
    out2 = jax.block_until_ready(out2)
    ref2 = _reference(a2, p2, n2, margin=0.2, reduce="sum")
    assert jnp.allclose(out2, ref2, atol=1e-4, rtol=1e-5), (out2, ref2)

    # Case 3: lane-full feature dim (D = 128, no packing), 'mean' reduction.
    k_a3, k_p3, k_n3 = jax.random.split(jax.random.PRNGKey(2), 3)
    B3, D3 = 24, 128
    a3 = jax.random.normal(k_a3, (B3, D3), dtype=jnp.float32)
    p3 = jax.random.normal(k_p3, (B3, D3), dtype=jnp.float32)
    n3 = jax.random.normal(k_n3, (B3, D3), dtype=jnp.float32)

    out3 = triplet_loss(a3, p3, n3, margin=0.2, reduce="mean")
    out3 = jax.block_until_ready(out3)
    ref3 = _reference(a3, p3, n3, margin=0.2, reduce="mean")
    assert jnp.allclose(out3, ref3, atol=1e-4, rtol=1e-5), (out3, ref3)

    print("KERNEL_OK")
</pallas_src>

<mosaic_0001>
module attributes {stable_mosaic.version = 11 : i64} {
  func.func @_triplet_loss_kernel(%arg0: i32, %arg1: memref<8x128xf32, #tpu.memory_space<vmem>>, %arg2: memref<8x128xf32, #tpu.memory_space<vmem>>, %arg3: memref<8x128xf32, #tpu.memory_space<vmem>>, %arg4: memref<1x1x128xf32, #tpu.memory_space<vmem>>) attributes {dimension_semantics = [#tpu.dimension_semantics<parallel>], iteration_bounds = array<i64: 1>, scalar_prefetch = 0 : i64, scratch_operands = 0 : i64, tpu.core_type = #tpu.core_type<tc>, window_params = [{transform_indices = @transform_0, window_bounds = array<i64: 8, 128>}, {transform_indices = @transform_1, window_bounds = array<i64: 8, 128>}, {transform_indices = @transform_2, window_bounds = array<i64: 8, 128>}, {transform_indices = @transform_3, window_bounds = array<i64: 1, 1, 128>}]} {
    %c0 = arith.constant 0 : index
    %c0_0 = arith.constant 0 : index
    %0 = vector.load %arg1[%c0, %c0_0] : memref<8x128xf32, #tpu.memory_space<vmem>>, vector<8x128xf32>
    %c0_1 = arith.constant 0 : index
    %c0_2 = arith.constant 0 : index
    %1 = vector.load %arg2[%c0_1, %c0_2] : memref<8x128xf32, #tpu.memory_space<vmem>>, vector<8x128xf32>
    %c0_3 = arith.constant 0 : index
    %c0_4 = arith.constant 0 : index
    %2 = vector.load %arg3[%c0_3, %c0_4] : memref<8x128xf32, #tpu.memory_space<vmem>>, vector<8x128xf32>
    %3 = arith.subf %0, %1 : vector<8x128xf32>
    %4 = arith.subf %0, %2 : vector<8x128xf32>
    %5 = arith.mulf %3, %3 : vector<8x128xf32>
    %6 = arith.mulf %4, %4 : vector<8x128xf32>
    %7 = arith.subf %5, %6 : vector<8x128xf32>
    %c8_i32 = arith.constant 8 : i32
    %8 = arith.muli %arg0, %c8_i32 : i32
    %9 = tpu.iota {dimensions = array<i32: 0>} : vector<8x1xi32>
    %10 = vector.broadcast %8 : i32 to vector<8x1xi32>
    %11 = arith.addi %10, %9 : vector<8x1xi32>
    %12 = vector.extract_strided_slice %7 {offsets = [0, 0], sizes = [8, 32], strides = [1, 1]} : vector<8x128xf32> to vector<8x32xf32>
    %cst = arith.constant dense<0.000000e+00> : vector<8xf32>
    %13 = vector.multi_reduction <add>, %12, %cst [1] : vector<8x32xf32> to vector<8xf32>
    %14 = vector.shape_cast %13 : vector<8xf32> to vector<8x1xf32>
    %cst_5 = arith.constant 2.000000e-01 : f32
    %15 = vector.broadcast %cst_5 : f32 to vector<8x1xf32>
    %16 = arith.addf %14, %15 : vector<8x1xf32>
    %cst_6 = arith.constant 0.000000e+00 : f32
    %17 = vector.broadcast %cst_6 : f32 to vector<8x1xf32>
    %18 = arith.maximumf %16, %17 : vector<8x1xf32>
    %c4_i32 = arith.constant 4 : i32
    %19 = vector.broadcast %c4_i32 : i32 to vector<8x1xi32>
    %20 = arith.muli %11, %19 : vector<8x1xi32>
    %c0_i32 = arith.constant 0 : i32
    %21 = vector.broadcast %c0_i32 : i32 to vector<8x1xi32>
    %22 = arith.addi %20, %21 : vector<8x1xi32>
    %c8_i32_7 = arith.constant 8 : i32
    %23 = vector.broadcast %c8_i32_7 : i32 to vector<8x1xi32>
    %24 = arith.cmpi slt, %22, %23 : vector<8x1xi32>
    %cst_8 = arith.constant 0.000000e+00 : f32
    %25 = vector.broadcast %cst_8 : f32 to vector<8x1xf32>
    %26 = arith.select %24, %18, %25 : vector<8x1xi1>, vector<8x1xf32>
    %27 = vector.shape_cast %26 : vector<8x1xf32> to vector<1x8x1xf32>
    %cst_9 = arith.constant dense<0.000000e+00> : vector<1xf32>
    %28 = vector.multi_reduction <add>, %27, %cst_9 [1, 2] : vector<1x8x1xf32> to vector<1xf32>
    %29 = vector.shape_cast %28 : vector<1xf32> to vector<1x1x1xf32>
    %30 = vector.extract %29[0, 0, 0] : f32 from vector<1x1x1xf32>
    %cst_10 = arith.constant 0.000000e+00 : f32
    %31 = arith.addf %cst_10, %30 : f32
    %32 = vector.extract_strided_slice %7 {offsets = [0, 32], sizes = [8, 32], strides = [1, 1]} : vector<8x128xf32> to vector<8x32xf32>
    %cst_11 = arith.constant dense<0.000000e+00> : vector<8xf32>
    %33 = vector.multi_reduction <add>, %32, %cst_11 [1] : vector<8x32xf32> to vector<8xf32>
    %34 = vector.shape_cast %33 : vector<8xf32> to vector<8x1xf32>
    %cst_12 = arith.constant 2.000000e-01 : f32
    %35 = vector.broadcast %cst_12 : f32 to vector<8x1xf32>
    %36 = arith.addf %34, %35 : vector<8x1xf32>
    %cst_13 = arith.constant 0.000000e+00 : f32
    %37 = vector.broadcast %cst_13 : f32 to vector<8x1xf32>
    %38 = arith.maximumf %36, %37 : vector<8x1xf32>
    %c4_i32_14 = arith.constant 4 : i32
    %39 = vector.broadcast %c4_i32_14 : i32 to vector<8x1xi32>
    %40 = arith.muli %11, %39 : vector<8x1xi32>
    %c1_i32 = arith.constant 1 : i32
    %41 = vector.broadcast %c1_i32 : i32 to vector<8x1xi32>
    %42 = arith.addi %40, %41 : vector<8x1xi32>
    %c8_i32_15 = arith.constant 8 : i32
    %43 = vector.broadcast %c8_i32_15 : i32 to vector<8x1xi32>
    %44 = arith.cmpi slt, %42, %43 : vector<8x1xi32>
    %cst_16 = arith.constant 0.000000e+00 : f32
    %45 = vector.broadcast %cst_16 : f32 to vector<8x1xf32>
    %46 = arith.select %44, %38, %45 : vector<8x1xi1>, vector<8x1xf32>
    %47 = vector.shape_cast %46 : vector<8x1xf32> to vector<1x8x1xf32>
    %cst_17 = arith.constant dense<0.000000e+00> : vector<1xf32>
    %48 = vector.multi_reduction <add>, %47, %cst_17 [1, 2] : vector<1x8x1xf32> to vector<1xf32>
    %49 = vector.shape_cast %48 : vector<1xf32> to vector<1x1x1xf32>
    %50 = vector.extract %49[0, 0, 0] : f32 from vector<1x1x1xf32>
    %51 = arith.addf %31, %50 : f32
    %52 = vector.extract_strided_slice %7 {offsets = [0, 64], sizes = [8, 32], strides = [1, 1]} : vector<8x128xf32> to vector<8x32xf32>
    %cst_18 = arith.constant dense<0.000000e+00> : vector<8xf32>
    %53 = vector.multi_reduction <add>, %52, %cst_18 [1] : vector<8x32xf32> to vector<8xf32>
    %54 = vector.shape_cast %53 : vector<8xf32> to vector<8x1xf32>
    %cst_19 = arith.constant 2.000000e-01 : f32
    %55 = vector.broadcast %cst_19 : f32 to vector<8x1xf32>
    %56 = arith.addf %54, %55 : vector<8x1xf32>
    %cst_20 = arith.constant 0.000000e+00 : f32
    %57 = vector.broadcast %cst_20 : f32 to vector<8x1xf32>
    %58 = arith.maximumf %56, %57 : vector<8x1xf32>
    %c4_i32_21 = arith.constant 4 : i32
    %59 = vector.broadcast %c4_i32_21 : i32 to vector<8x1xi32>
    %60 = arith.muli %11, %59 : vector<8x1xi32>
    %c2_i32 = arith.constant 2 : i32
    %61 = vector.broadcast %c2_i32 : i32 to vector<8x1xi32>
    %62 = arith.addi %60, %61 : vector<8x1xi32>
    %c8_i32_22 = arith.constant 8 : i32
    %63 = vector.broadcast %c8_i32_22 : i32 to vector<8x1xi32>
    %64 = arith.cmpi slt, %62, %63 : vector<8x1xi32>
    %cst_23 = arith.constant 0.000000e+00 : f32
    %65 = vector.broadcast %cst_23 : f32 to vector<8x1xf32>
    %66 = arith.select %64, %58, %65 : vector<8x1xi1>, vector<8x1xf32>
    %67 = vector.shape_cast %66 : vector<8x1xf32> to vector<1x8x1xf32>
    %cst_24 = arith.constant dense<0.000000e+00> : vector<1xf32>
    %68 = vector.multi_reduction <add>, %67, %cst_24 [1, 2] : vector<1x8x1xf32> to vector<1xf32>
    %69 = vector.shape_cast %68 : vector<1xf32> to vector<1x1x1xf32>
    %70 = vector.extract %69[0, 0, 0] : f32 from vector<1x1x1xf32>
    %71 = arith.addf %51, %70 : f32
    %72 = vector.extract_strided_slice %7 {offsets = [0, 96], sizes = [8, 32], strides = [1, 1]} : vector<8x128xf32> to vector<8x32xf32>
    %cst_25 = arith.constant dense<0.000000e+00> : vector<8xf32>
    %73 = vector.multi_reduction <add>, %72, %cst_25 [1] : vector<8x32xf32> to vector<8xf32>
    %74 = vector.shape_cast %73 : vector<8xf32> to vector<8x1xf32>
    %cst_26 = arith.constant 2.000000e-01 : f32
    %75 = vector.broadcast %cst_26 : f32 to vector<8x1xf32>
    %76 = arith.addf %74, %75 : vector<8x1xf32>
    %cst_27 = arith.constant 0.000000e+00 : f32
    %77 = vector.broadcast %cst_27 : f32 to vector<8x1xf32>
    %78 = arith.maximumf %76, %77 : vector<8x1xf32>
    %c4_i32_28 = arith.constant 4 : i32
    %79 = vector.broadcast %c4_i32_28 : i32 to vector<8x1xi32>
    %80 = arith.muli %11, %79 : vector<8x1xi32>
    %c3_i32 = arith.constant 3 : i32
    %81 = vector.broadcast %c3_i32 : i32 to vector<8x1xi32>
    %82 = arith.addi %80, %81 : vector<8x1xi32>
    %c8_i32_29 = arith.constant 8 : i32
    %83 = vector.broadcast %c8_i32_29 : i32 to vector<8x1xi32>
    %84 = arith.cmpi slt, %82, %83 : vector<8x1xi32>
    %cst_30 = arith.constant 0.000000e+00 : f32
    %85 = vector.broadcast %cst_30 : f32 to vector<8x1xf32>
    %86 = arith.select %84, %78, %85 : vector<8x1xi1>, vector<8x1xf32>
    %87 = vector.shape_cast %86 : vector<8x1xf32> to vector<1x8x1xf32>
    %cst_31 = arith.constant dense<0.000000e+00> : vector<1xf32>
    %88 = vector.multi_reduction <add>, %87, %cst_31 [1, 2] : vector<1x8x1xf32> to vector<1xf32>
    %89 = vector.shape_cast %88 : vector<1xf32> to vector<1x1x1xf32>
    %90 = vector.extract %89[0, 0, 0] : f32 from vector<1x1x1xf32>
    %91 = arith.addf %71, %90 : f32
    %92 = vector.broadcast %91 : f32 to vector<1x1x128xf32>
    %c0_32 = arith.constant 0 : index
    %c0_33 = arith.constant 0 : index
    %c0_34 = arith.constant 0 : index
    %93 = vector.load %arg4[%c0_32, %c0_33, %c0_34] : memref<1x1x128xf32, #tpu.memory_space<vmem>>, vector<1x1x128xf32>
    tpu.vector_store %arg4[%c0_32, %c0_33, %c0_34], %92 {strides = array<i32>} : memref<1x1x128xf32, #tpu.memory_space<vmem>>, vector<1x1x128xf32>,
    return
  }
  func.func @transform_0(%arg0: i32) -> (i32, i32) {
    %c0_i32 = arith.constant 0 : i32
    %c0_i32_0 = arith.constant 0 : i32
    return %arg0, %c0_i32 : i32, i32
  }
  func.func @transform_1(%arg0: i32) -> (i32, i32) {
    %c0_i32 = arith.constant 0 : i32
    %c0_i32_0 = arith.constant 0 : i32
    return %arg0, %c0_i32 : i32, i32
  }
  func.func @transform_2(%arg0: i32) -> (i32, i32) {
    %c0_i32 = arith.constant 0 : i32
    %c0_i32_0 = arith.constant 0 : i32
    return %arg0, %c0_i32 : i32, i32
  }
  func.func @transform_3(%arg0: i32) -> (i32, i32, i32) {
    %c0_i32 = arith.constant 0 : i32
    %c0_i32_0 = arith.constant 0 : i32
    %c0_i32_1 = arith.constant 0 : i32
    return %arg0, %c0_i32, %c0_i32_0 : i32, i32, i32
  }
}

</mosaic_0001>

<bundles_post_ra>
// kernel: tpu_custom_call.1
= control target key start
LH: loop header
LB: loop body
LE: loop exit
PB: predicated region body
PF: predicated region fallthrough
CT: control target
= control target key end

     0   :  { %8 = vsyncpa [#allocation3], 0  ;;  %s352_s0 = inlined_call_operand.hbm [shape: f32[2,128], index: 0, kind: input, shape index: {}]   ;;  %s353_s1 = inlined_call_operand.hbm [shape: f32[2,128], index: 1, kind: input, shape index: {}]   ;;  %s354_s2 = inlined_call_operand.hbm [shape: f32[2,128], index: 2, kind: input, shape index: {}]   ;;  %s355_s3 = inlined_call_operand.hbm [shape: f32[1,1,128], index: 3, kind: output, shape index: {}]  }
   0x1   :  { %9 = vsyncpa [#allocation6], 0 }
   0x2   :  { %10 = vsyncpa [#allocation4], 0 }
   0x3   :  { %14 = vsyncadd [#allocation3], 96  ;;  %s15_s14 = sshll.u32 %s352_s0, 4  ;;  %s301_s15 = smov [#allocation2]   ;;  %s16_s14 = int_to_ptr.hbm [resolvable:$true] %s15_s14 }
   0x4   :  { %s17_s16 = sshll.u32 %s301_s15, 4  ;;  %s302_s17 = smov 32   ;;  %s18_s16 = int_to_ptr.vmem [resolvable:$true] %s17_s16 }
   0x5   :  { %s303_s18 = smov 2  }
   0x6   :  { %23 = dma.hbm_to_vmem [thread:$0]  %s16_s14, 32, %s18_s16, [#allocation3], %s302_s17, %s302_s17, %s303_s18  }
   0x7   :  { %27 = vsyncadd [#allocation6], 96  ;;  %s28_s21 = sshll.u32 %s353_s1, 4  ;;  %s304_s22 = smov [#allocation5]   ;;  %s29_s21 = int_to_ptr.hbm [resolvable:$true] %s28_s21 }
   0x8   :  { %s30_s23 = sshll.u32 %s304_s22, 4  ;;  %s31_s23 = int_to_ptr.vmem [resolvable:$true] %s30_s23 }
   0x9   :  { %36 = dma.hbm_to_vmem [thread:$0]  %s29_s21, 32, %s31_s23, [#allocation6], %s302_s17, %s302_s17, %s303_s18  }
   0xa   :  { %40 = vsyncadd [#allocation6], 96  ;;  %s41_s25 = sshll.u32 %s354_s2, 4  ;;  %s305_s26 = smov [#allocation7]   ;;  %s42_s25 = int_to_ptr.hbm [resolvable:$true] %s41_s25 }
   0xb   :  { %s43_s27 = sshll.u32 %s305_s26, 4  ;;  %s44_s27 = int_to_ptr.vmem [resolvable:$true] %s43_s27 }
   0xc   :  { %49 = dma.hbm_to_vmem [thread:$0]  %s42_s25, 32, %s44_s27, [#allocation6], %s302_s17, %s302_s17, %s303_s18  }
   0xd   :  { %295 = dma.done.wait [#allocation3], 128  }
   0xe   :  { %296 = vsyncadd [#allocation3], 4294967168 }
   0xf   :  { %297 = dma.done.wait [#allocation6], 256  }
  0x10   :  { %298 = vsyncadd [#allocation6], 4294967040  ;;  %v62_v0 = vld [vmem:[#allocation2] sm:$0xff]  ;;  %v63_v1 = vld [vmem:[#allocation5] sm:$0xff]  ;;  %s306_s1 = smov 96   ;;  %s307_s2 = smov 64   ;;  %v71_v15 = vlaneseq }
  0x11   :  { %v64_v2 = vld [vmem:[#allocation7] sm:$0xff]  ;;  %v65_v3 = vsub.f32 %v62_v0, %v63_v1  ;;  %vm75_vm0 = vcmask 261120   ;;  %vm84_vm2 = vcmask 7168   ;;  %s308_s5 = smov [#allocation8]   ;;  %s172_s10 = sshll.u32 %s355_s3, 4  ;;  %s173_s10 = int_to_ptr.hbm [resolvable:$true] %s172_s10 }
  0x12   :  { %v66_v4 = vsub.f32 %v62_v0, %v64_v2  ;;  %v72_v16 = vshrl.u32 %v71_v15, 7  ;;  %s170_s6 = sshll.u32 %s308_s5, 4  ;;  %s171_s6 = int_to_ptr.vmem [resolvable:$true] %s170_s6 }
  0x13   :  { %v67_v5 = vmul.f32 %v65_v3, %v65_v3 }
  0x14   :  { %v68_v6 = vmul.f32 %v66_v4, %v66_v4  ;;  %v81_v17 = vmul.u32 4, %v72_v16 }
  0x16   :  { %v69_v7 = vsub.f32 %v67_v5, %v68_v6  ;;  %vm82_vm1 = vcmp.lt.s32.totalorder %v81_v17, 8  ;;  %v105_v23 = vadd.s32 1, %v81_v17  ;;  %v127_v29 = vadd.s32 2, %v81_v17 }
  0x17   :  { %v149_v34 = vadd.s32 3, %v81_v17 }
  0x18   :  { %97 = vrot.lane.b32.xlu0 %v69_v7, %s306_s1  ;;  %141 = vrot.lane.b32.xlu1 %v69_v7, %s302_s17  ;;  %v76_v8 = vsel %vm75_vm0, %v69_v7, 0.0  ;;  %vm106_vm3 = vcmp.lt.s32.totalorder %v105_v23, 8  ;;  %vm128_vm4 = vcmp.lt.s32.totalorder %v127_v29, 8 }
  0x19   :  { %vm150_vm5 = vcmp.lt.s32.totalorder %v149_v34, 8 }
  0x20   :  { %119 = vrot.lane.b32.xlu0 %v69_v7, %s307_s2 }
  0x42   :  { %77 = vadd.xlane.f32.xlu1 %v76_v8 }
  0x8a   :  { %v98_v9 = vpop.permute.xlu0 %97  ;;  %v142_v10 = vpop.permute.xlu1 %141 }
  0x8b   :  { %v100_v11 = vsel %vm75_vm0, %v98_v9, 0.0  ;;  %v144_v12 = vsel %vm75_vm0, %v142_v10, 0.0 }
  0x8c   :  { %101 = vadd.xlane.f32.xlu2 %v100_v11  ;;  %145 = vadd.xlane.f32.xlu0 %v144_v12 }
  0x92   :  { %v120_v13 = vpop.permute.xlu0 %119 }
  0x93   :  { %v122_v14 = vsel %vm75_vm0, %v120_v13, 0.0 }
  0x94   :  { %123 = vadd.xlane.f32.xlu2 %v122_v14 }
  0xb5   :  { %v78_v18 = vpop.xlane.xlu1 %77 }
  0xb6   :  { %v79_v19 = vadd.f32 0.2, %v78_v18 }
  0xb8   :  { %v80_v20 = vmax.f32 %v79_v19, 0.0 }
  0xba   :  { %v83_v21 = vsel %vm82_vm1, %v80_v20, 0.0 }
  0xbb   :  { %v85_v22 = vsel %vm84_vm2, %v83_v21, 0.0 }
  0xbc   :  { %86 = vadd.xlane.f32.xlu2 %v85_v22 }
  0xff   :  { %v102_v24 = vpop.xlane.xlu2 %101  ;;  %v146_v30 = vpop.xlane.xlu0 %145 }
 0x100   :  { %v103_v25 = vadd.f32 0.2, %v102_v24  ;;  %v147_v33 = vadd.f32 0.2, %v146_v30 }
 0x102   :  { %v104_v26 = vmax.f32 %v103_v25, 0.0  ;;  %v148_v37 = vmax.f32 %v147_v33, 0.0 }
 0x104   :  { %v107_v27 = vsel %vm106_vm3, %v104_v26, 0.0  ;;  %v151_v39 = vsel %vm150_vm5, %v148_v37, 0.0 }
 0x105   :  { %v108_v28 = vsel %vm84_vm2, %v107_v27, 0.0  ;;  %v152_v40 = vsel %vm84_vm2, %v151_v39, 0.0 }
 0x106   :  { %109 = vadd.xlane.f32.xlu2 %v108_v28 }
 0x107   :  { %v124_v31 = vpop.xlane.xlu2 %123 }
 0x108   :  { %v125_v32 = vadd.f32 0.2, %v124_v31 }
 0x10a   :  { %v126_v35 = vmax.f32 %v125_v32, 0.0 }
 0x10c   :  { %v129_v36 = vsel %vm128_vm4, %v126_v35, 0.0 }
 0x10d   :  { %v130_v38 = vsel %vm84_vm2, %v129_v36, 0.0 }
 0x10e   :  { %131 = vadd.xlane.f32.xlu2 %v130_v38 }
 0x116   :  { %153 = vadd.xlane.f32.xlu2 %v152_v40 }
 0x12f   :  { %v87_v41 = vpop.xlane.xlu2 %86 }
 0x130   :  { %v88_v42 = vrot.slane %v87_v41, 4 }
 0x132   :  { %v89_v43 = vadd.f32 %v88_v42, %v87_v41 }
 0x134   :  { %v90_v44 = vrot.slane %v89_v43, 2 }
 0x136   :  { %v91_v45 = vadd.f32 %v90_v44, %v89_v43 }
 0x138   :  { %v92_v46 = vrot.slane %v91_v45, 1 }
 0x13a   :  { %v93_v47 = vadd.f32 %v92_v46, %v91_v45 }
 0x13c   :  { %183 = vpush %v93_v47 }
 0x16d   :  { %s184_s28 = spop %183 }
 0x179   :  { %v110_v48 = vpop.xlane.xlu2 %109 }
 0x17a   :  { %v111_v49 = vrot.slane %v110_v48, 4 }
 0x17c   :  { %v112_v50 = vadd.f32 %v111_v49, %v110_v48 }
 0x17e   :  { %v113_v51 = vrot.slane %v112_v50, 2 }
 0x180   :  { %v114_v52 = vadd.f32 %v113_v51, %v112_v50 }
 0x181   :  { %v132_v53 = vpop.xlane.xlu2 %131 }
 0x182   :  { %v133_v54 = vrot.slane %v132_v53, 4  ;;  %v115_v55 = vrot.slane %v114_v52, 1 }
 0x184   :  { %v134_v56 = vadd.f32 %v133_v54, %v132_v53  ;;  %v116_v57 = vadd.f32 %v115_v55, %v114_v52 }
 0x186   :  { %v135_v58 = vrot.slane %v134_v56, 2  ;;  %185 = vpush %v116_v57 }
 0x188   :  { %v136_v59 = vadd.f32 %v135_v58, %v134_v56 }
 0x189   :  { %v154_v60 = vpop.xlane.xlu2 %153 }
 0x18a   :  { %v155_v61 = vrot.slane %v154_v60, 4  ;;  %v137_v62 = vrot.slane %v136_v59, 1 }
 0x18c   :  { %v156_v63 = vadd.f32 %v155_v61, %v154_v60  ;;  %v138_v0 = vadd.f32 %v137_v62, %v136_v59 }
 0x18e   :  { %v157_v1 = vrot.slane %v156_v63, 2  ;;  %187 = vpush %v138_v0 }
 0x190   :  { %v158_v2 = vadd.f32 %v157_v1, %v156_v63 }
 0x192   :  { %v159_v3 = vrot.slane %v158_v2, 1 }
 0x194   :  { %v160_v4 = vadd.f32 %v159_v3, %v158_v2 }
 0x196   :  { %189 = vpush %v160_v4 }
 0x1b7   :  { %s186_s29 = spop %185 }
 0x1b8   :  { %s118_s4 = sadd.f32 %s186_s29, %s184_s28 }
 0x1bf   :  { %s188_s30 = spop %187 }
 0x1c0   :  { %s140_s7 = sadd.f32 %s188_s30, %s118_s4 }
 0x1c7   :  { %s190_s11 = spop %189 }
 0x1c8   :  { %s162_s12 = sadd.f32 %s190_s11, %s140_s7 }
 0x1ca   :  { %v163_v5 = vstv %s162_s12 }
 0x1cb   :  { %164 = vst [vmem:[#allocation8] sm:$0x1] %v163_v5 }
 0x1cc   :  { %175 = dma.vmem_to_hbm [thread:$0]  %s171_s6, 16, %s173_s10, [#allocation4]  }
 0x1cd   :  { %299 = dma.done.wait [#allocation4], 16  }
 0x1ce   :  { %300 = vsyncadd [#allocation4], 4294967280 }
 0x1cf   :  { %180 = vsyncpa [#allocation3], 1 }
 0x1d0   :  { %181 = vsyncpa [#allocation6], 1 }
 0x1d1   :  { %182 = vsyncpa [#allocation4], 1 }

</bundles_post_ra>
